<compile_context>
chip_gen: v7x
topology: tpu7x:2x2x1
jax: 0.10.0
libtpu: 0.0.40
codegen_flags: <defaults>
</compile_context>

<pallas_src>
import functools

import jax
import jax.numpy as jnp
import numpy as np
from jax.experimental import pallas as pl
from jax.experimental.pallas import tpu as pltpu

_LANE = 128


def _round_up(x, m):
    return (x + m - 1) // m * m


def _sparse_conv1d_kernel(x_hbm, w_ref, o_ref, xbuf, sem, *,
                          shifted_offsets, tile_len, win_len):
    """One grid step: compute out[b, :, l*T:(l+1)*T]."""
    b = pl.program_id(0)
    l = pl.program_id(1)
    n_tiles = pl.num_programs(1)

    def window_copy(tile_idx, slot):
        start = pl.multiple_of(tile_idx * tile_len, _LANE)
        return pltpu.make_async_copy(
            x_hbm.at[b, :, pl.ds(start, win_len)],   # (C, win_len) in HBM
            xbuf.at[slot],                           # (C, win_len) in VMEM
            sem.at[slot])

    # Prime the double buffer at the first tile of every batch row.
    @pl.when(l == 0)
    def _():
        window_copy(0, 0).start()

    slot = l % 2

    # Wait for this tile's haloed window.
    window_copy(l, slot).wait()

    # Prefetch the next tile's window of this row while computing this one.
    @pl.when(l + 1 < n_tiles)
    def _():
        window_copy(l + 1, 1 - slot).start()

    # im2col: K static lane-shifted slices stacked along sublanes, then ONE
    # fused MXU matmul (O, C*K) @ (C*K, T) with fp32 accumulation.
    xw = xbuf[slot]                                             # (C, W) bf16
    taps = [xw[:, d:d + tile_len] for d in shifted_offsets]     # K x (C, T)
    unfold = jnp.concatenate(taps, axis=0)                      # (C*K, T)
    acc = jnp.dot(w_ref[...], unfold,
                  preferred_element_type=jnp.float32)           # (O, T) f32
    o_ref[0] = acc.astype(o_ref.dtype)


def sparse_conv1d(x, weights, sk_ind, *, tile_len=None):
    """x: (B, C, L) float32; weights: (O, C, K) float32; sk_ind: K static ints."""
    B, C, L = x.shape
    O, Cw, K = weights.shape
    assert Cw == C and K == len(sk_ind)

    sk = [int(i) for i in sk_ind]
    low_pad = max(0 - min(sk), 0)
    high_pad = max(0, max(sk))
    assert low_pad + high_pad <= _LANE, (
        "tap span must fit within a single 128-lane halo")
    # TODO(synk): support tap spans > 128 lanes by widening the halo window.

    if tile_len is None:
        tile_len = min(512, _round_up(L, _LANE))
    tile_len = _round_up(tile_len, _LANE)
    n_tiles = -(-L // tile_len)
    l_out = n_tiles * tile_len
    win_len = tile_len + _LANE          # lane-aligned haloed window
    lp = l_out + _LANE                  # padded length: every window in bounds

    # Zero-pad the length axis (same zero semantics as the reference module)
    # and cast to bf16 for the MXU; accumulation stays fp32, output stays f32.
    # TODO(synk): folding the edge zero-masking into the kernel's first/last
    # windows would remove this extra XLA pass over x.
    x_pad = jnp.pad(x.astype(jnp.bfloat16),
                    ((0, 0), (0, 0), (low_pad, lp - low_pad - L)))

    # Single lane-dense weight slab: im2col row (j*C + c) pairs with W[o, c, j].
    w2d = jnp.transpose(weights, (0, 2, 1)).reshape(O, K * C).astype(jnp.bfloat16)

    shifted = tuple(d + low_pad for d in sk)   # static in-window tap offsets

    kernel = functools.partial(
        _sparse_conv1d_kernel,
        shifted_offsets=shifted, tile_len=tile_len, win_len=win_len)

    return pl.pallas_call(
        kernel,
        out_shape=jax.ShapeDtypeStruct((B, O, L), jnp.float32),
        grid_spec=pltpu.PrefetchScalarGridSpec(
            num_scalar_prefetch=0,
            grid=(B, n_tiles),
            in_specs=[
                pl.BlockSpec(memory_space=pl.ANY),              # x stays in HBM
                pl.BlockSpec((O, K * C), lambda b, l: (0, 0)),  # weight slab
            ],
            # Partial final block (L % tile_len != 0) is clipped by Pallas.
            out_specs=pl.BlockSpec((1, O, tile_len), lambda b, l: (b, 0, l)),
            scratch_shapes=[
                pltpu.VMEM((2, C, win_len), jnp.bfloat16),      # double buffer
                pltpu.SemaphoreType.DMA((2,)),
            ],
        ),
        compiler_params=pltpu.CompilerParams(
            dimension_semantics=("parallel", "arbitrary"),
            vmem_limit_bytes=32 * 1024 * 1024,
        ),
    )(x_pad, w2d)


def sparse_conv1d_ref(x, weights, sk_ind):
    """Pure-JAX fp32 reference mirroring the PyTorch forward."""
    B, C, L = x.shape
    O, _, K = weights.shape
    sk = np.asarray(sk_ind, dtype=int)
    low_pad = int(max(0 - sk.min(), 0))
    high_pad = int(max(0, sk.max()))
    x_pad = jnp.pad(x, ((0, 0), (0, 0), (low_pad, high_pad)))
    # unfolded[b, c, j, t] = x_zeropad[b, c, t + sk[j]]
    unfolded = jnp.stack(
        [x_pad[:, :, d + low_pad:d + low_pad + L] for d in sk], axis=2)
    w2d = weights.reshape(O, C * K)
    unf2d = unfolded.reshape(B, C * K, L)
    return jnp.einsum('ok,bkl->bol', w2d, unf2d)


if __name__ == "__main__":
    # Shapes consistent with the module: batch=2, in=4, out=3, taps [-2,0,1,3].
    sk_ind = [-2, 0, 1, 3]
    B, C, O = 2, 4, 3

    key = jax.random.PRNGKey(0)
    kx, kw, kx2 = jax.random.split(key, 3)
    weights = jax.random.normal(kw, (O, C, len(sk_ind)), dtype=jnp.float32)

    def check(x, tile_len=None):
        out = jax.block_until_ready(
            sparse_conv1d(x, weights, sk_ind, tile_len=tile_len))
        # Kernel feeds the MXU bf16 operands with fp32 accumulation, so compare
        # against the fp32 reference evaluated on bf16-rounded inputs (the
        # bf16 products are exact in fp32, so only the accumulation order
        # differs).
        xq = x.astype(jnp.bfloat16).astype(jnp.float32)
        wq = weights.astype(jnp.bfloat16).astype(jnp.float32)
        ref = sparse_conv1d_ref(xq, wq, sk_ind)
        assert out.shape == ref.shape, (out.shape, ref.shape)
        assert jnp.allclose(out, ref, atol=1e-3, rtol=1e-3), (
            float(jnp.max(jnp.abs(out - ref))))

    # Small case: L = 16 (single length tile, partial lane writeback).
    x16 = jax.random.normal(kx, (B, C, 16), dtype=jnp.float32)
    check(x16)

    # Multi-tile case: exercises the haloed-window prefetch across L tiles
    # plus a partial final output block (300 = 2*128 + 44).
    x300 = jax.random.normal(kx2, (B, C, 300), dtype=jnp.float32)
    check(x300, tile_len=128)

    print("KERNEL_OK")
</pallas_src>

<mosaic_0001>
module attributes {stable_mosaic.version = 11 : i64} {
  func.func @_sparse_conv1d_kernel(%arg0: i32, %arg1: i32, %arg2: memref<2x4x256xbf16, #tpu.memory_space<any>>, %arg3: memref<3x16xbf16, #tpu.memory_space<vmem>>, %arg4: memref<1x3x128xf32, #tpu.memory_space<vmem>>, %arg5: memref<2x4x256xbf16, #tpu.memory_space<vmem>>, %arg6: memref<2x!tpu.dma_semaphore, #tpu.memory_space<semaphore_mem>>) attributes {dimension_semantics = [#tpu.dimension_semantics<parallel>, #tpu.dimension_semantics<arbitrary>], iteration_bounds = array<i64: 2, 1>, scalar_prefetch = 0 : i64, scratch_operands = 2 : i64, tpu.core_type = #tpu.core_type<tc>, window_params = [{}, {pipeline_mode = #tpu.pipeline_mode<synchronous>, transform_indices = @transform_1, window_bounds = array<i64: 3, 16>}, {transform_indices = @transform_2, window_bounds = array<i64: 1, 3, 128>}]} {
    %c0_i32 = arith.constant 0 : i32
    %0 = arith.cmpi eq, %arg1, %c0_i32 : i32
    %1 = arith.extui %0 : i1 to i32
    %c0_i32_0 = arith.constant 0 : i32
    %2 = arith.cmpi ne, %1, %c0_i32_0 : i32
    scf.if %2 {
      %c0_i32_17 = arith.constant 0 : i32
      %38 = tpu.assume_multiple %c0_i32_17, 128 : i32
      %c0_i32_18 = arith.constant 0 : i32
      %c0_i32_19 = arith.constant 0 : i32
      %c0_i32_20 = arith.constant 0 : i32
      %39 = tpu.memref_slice %arg2[%arg0, %c0_i32_20, %38] : memref<2x4x256xbf16, #tpu.memory_space<any>> -> memref<1x4x256xbf16, #tpu.memory_space<any>>
      %40 = tpu.memref_squeeze %39 : memref<1x4x256xbf16, #tpu.memory_space<any>> -> memref<4x256xbf16, #tpu.memory_space<any>>
      %c0_i32_21 = arith.constant 0 : i32
      %c0_i32_22 = arith.constant 0 : i32
      %41 = tpu.memref_slice %arg5[%c0_i32_18, %c0_i32_21, %c0_i32_22] : memref<2x4x256xbf16, #tpu.memory_space<vmem>> -> memref<1x4x256xbf16, #tpu.memory_space<vmem>>
      %42 = tpu.memref_squeeze %41 : memref<1x4x256xbf16, #tpu.memory_space<vmem>> -> memref<4x256xbf16, #tpu.memory_space<vmem>>
      %43 = tpu.memref_slice %arg6[%c0_i32_19] : memref<2x!tpu.dma_semaphore, #tpu.memory_space<semaphore_mem>> -> memref<1x!tpu.dma_semaphore, #tpu.memory_space<semaphore_mem>>
      %44 = tpu.memref_squeeze %43 : memref<1x!tpu.dma_semaphore, #tpu.memory_space<semaphore_mem>> -> memref<!tpu.dma_semaphore, #tpu.memory_space<semaphore_mem>>
      tpu.enqueue_dma source(%40 : memref<4x256xbf16, #tpu.memory_space<any>>) target(%42 : memref<4x256xbf16, #tpu.memory_space<vmem>>) target_semaphore(%44 : memref<!tpu.dma_semaphore, #tpu.memory_space<semaphore_mem>>)
    } else {
    }
    %c2_i32 = arith.constant 2 : i32
    %c0_i32_1 = arith.constant 0 : i32
    %3 = arith.cmpi eq, %c2_i32, %c0_i32_1 : i32
    %c1_i32 = arith.constant 1 : i32
    %4 = arith.select %3, %c1_i32, %c2_i32 : i32
    %5 = arith.remsi %arg1, %4 : i32
    %c0_i32_2 = arith.constant 0 : i32
    %6 = arith.cmpi ne, %5, %c0_i32_2 : i32
    %c0_i32_3 = arith.constant 0 : i32
    %7 = arith.cmpi slt, %5, %c0_i32_3 : i32
    %c0_i32_4 = arith.constant 0 : i32
    %8 = arith.cmpi slt, %4, %c0_i32_4 : i32
    %9 = arith.xori %7, %8 : i1
    %10 = arith.andi %9, %6 : i1
    %11 = arith.addi %5, %4 : i32
    %12 = arith.select %10, %11, %5 : i32
    %c128_i32 = arith.constant 128 : i32
    %13 = arith.muli %arg1, %c128_i32 : i32
    %14 = tpu.assume_multiple %13, 128 : i32
    %c0_i32_5 = arith.constant 0 : i32
    %15 = tpu.memref_slice %arg2[%arg0, %c0_i32_5, %14] : memref<2x4x256xbf16, #tpu.memory_space<any>> -> memref<1x4x256xbf16, #tpu.memory_space<any>>
    %16 = tpu.memref_squeeze %15 : memref<1x4x256xbf16, #tpu.memory_space<any>> -> memref<4x256xbf16, #tpu.memory_space<any>>
    %c0_i32_6 = arith.constant 0 : i32
    %c0_i32_7 = arith.constant 0 : i32
    %17 = tpu.memref_slice %arg5[%12, %c0_i32_6, %c0_i32_7] : memref<2x4x256xbf16, #tpu.memory_space<vmem>> -> memref<1x4x256xbf16, #tpu.memory_space<vmem>>
    %18 = tpu.memref_squeeze %17 : memref<1x4x256xbf16, #tpu.memory_space<vmem>> -> memref<4x256xbf16, #tpu.memory_space<vmem>>
    %19 = tpu.memref_slice %arg6[%12] : memref<2x!tpu.dma_semaphore, #tpu.memory_space<semaphore_mem>> -> memref<1x!tpu.dma_semaphore, #tpu.memory_space<semaphore_mem>>
    %20 = tpu.memref_squeeze %19 : memref<1x!tpu.dma_semaphore, #tpu.memory_space<semaphore_mem>> -> memref<!tpu.dma_semaphore, #tpu.memory_space<semaphore_mem>>
    tpu.wait_dma2 semaphore(%20 : memref<!tpu.dma_semaphore, #tpu.memory_space<semaphore_mem>>) src(%16 : memref<4x256xbf16, #tpu.memory_space<any>>) dst(%18 : memref<4x256xbf16, #tpu.memory_space<vmem>>)
    %c1_i32_8 = arith.constant 1 : i32
    %21 = arith.addi %arg1, %c1_i32_8 : i32
    %c1_i32_9 = arith.constant 1 : i32
    %22 = arith.cmpi slt, %21, %c1_i32_9 : i32
    %23 = arith.extui %22 : i1 to i32
    %c0_i32_10 = arith.constant 0 : i32
    %24 = arith.cmpi ne, %23, %c0_i32_10 : i32
    scf.if %24 {
      %c1_i32_17 = arith.constant 1 : i32
      %38 = arith.addi %arg1, %c1_i32_17 : i32
      %c1_i32_18 = arith.constant 1 : i32
      %39 = arith.subi %c1_i32_18, %12 : i32
      %c128_i32_19 = arith.constant 128 : i32
      %40 = arith.muli %38, %c128_i32_19 : i32
      %41 = tpu.assume_multiple %40, 128 : i32
      %c0_i32_20 = arith.constant 0 : i32
      %42 = tpu.memref_slice %arg2[%arg0, %c0_i32_20, %41] : memref<2x4x256xbf16, #tpu.memory_space<any>> -> memref<1x4x256xbf16, #tpu.memory_space<any>>
      %43 = tpu.memref_squeeze %42 : memref<1x4x256xbf16, #tpu.memory_space<any>> -> memref<4x256xbf16, #tpu.memory_space<any>>
      %c0_i32_21 = arith.constant 0 : i32
      %c0_i32_22 = arith.constant 0 : i32
      %44 = tpu.memref_slice %arg5[%39, %c0_i32_21, %c0_i32_22] : memref<2x4x256xbf16, #tpu.memory_space<vmem>> -> memref<1x4x256xbf16, #tpu.memory_space<vmem>>
      %45 = tpu.memref_squeeze %44 : memref<1x4x256xbf16, #tpu.memory_space<vmem>> -> memref<4x256xbf16, #tpu.memory_space<vmem>>
      %46 = tpu.memref_slice %arg6[%39] : memref<2x!tpu.dma_semaphore, #tpu.memory_space<semaphore_mem>> -> memref<1x!tpu.dma_semaphore, #tpu.memory_space<semaphore_mem>>
      %47 = tpu.memref_squeeze %46 : memref<1x!tpu.dma_semaphore, #tpu.memory_space<semaphore_mem>> -> memref<!tpu.dma_semaphore, #tpu.memory_space<semaphore_mem>>
      tpu.enqueue_dma source(%43 : memref<4x256xbf16, #tpu.memory_space<any>>) target(%45 : memref<4x256xbf16, #tpu.memory_space<vmem>>) target_semaphore(%47 : memref<!tpu.dma_semaphore, #tpu.memory_space<semaphore_mem>>)
    } else {
    }
    %25 = arith.index_cast %12 : i32 to index
    %c0 = arith.constant 0 : index
    %c0_11 = arith.constant 0 : index
    %26 = vector.load %arg5[%25, %c0, %c0_11] : memref<2x4x256xbf16, #tpu.memory_space<vmem>>, vector<1x4x256xbf16>
    %27 = vector.shape_cast %26 : vector<1x4x256xbf16> to vector<4x256xbf16>
    %28 = vector.extract_strided_slice %27 {offsets = [0, 0], sizes = [4, 128], strides = [1, 1]} : vector<4x256xbf16> to vector<4x128xbf16>
    %29 = vector.extract_strided_slice %27 {offsets = [0, 2], sizes = [4, 128], strides = [1, 1]} : vector<4x256xbf16> to vector<4x128xbf16>
    %30 = vector.extract_strided_slice %27 {offsets = [0, 3], sizes = [4, 128], strides = [1, 1]} : vector<4x256xbf16> to vector<4x128xbf16>
    %31 = vector.extract_strided_slice %27 {offsets = [0, 5], sizes = [4, 128], strides = [1, 1]} : vector<4x256xbf16> to vector<4x128xbf16>
    %32 = tpu.concatenate %28, %29, %30, %31 in 0 : vector<4x128xbf16>, vector<4x128xbf16>, vector<4x128xbf16>, vector<4x128xbf16> -> vector<16x128xbf16>
    %c0_12 = arith.constant 0 : index
    %c0_13 = arith.constant 0 : index
    %33 = vector.load %arg3[%c0_12, %c0_13] : memref<3x16xbf16, #tpu.memory_space<vmem>>, vector<3x16xbf16>
    %cst = arith.constant dense<0.000000e+00> : vector<3x128xf32>
    %34 = tpu.matmul %33, %32, %cst {dimension_numbers = #tpu.dot_dimension_numbers<[1], [0], [0], [1], [0, 0, 1, 1], [], []>} : vector<3x16xbf16>, vector<16x128xbf16>, vector<3x128xf32> -> vector<3x128xf32>
    %c0_14 = arith.constant 0 : index
    %c0_15 = arith.constant 0 : index
    %c0_16 = arith.constant 0 : index
    %35 = vector.load %arg4[%c0_14, %c0_15, %c0_16] : memref<1x3x128xf32, #tpu.memory_space<vmem>>, vector<1x3x128xf32>
    %36 = vector.shape_cast %35 : vector<1x3x128xf32> to vector<3x128xf32>
    %37 = vector.shape_cast %34 : vector<3x128xf32> to vector<1x3x128xf32>
    tpu.vector_store %arg4[%c0_14, %c0_15, %c0_16], %37 {strides = array<i32>} : memref<1x3x128xf32, #tpu.memory_space<vmem>>, vector<1x3x128xf32>,
    return
  }
  func.func @transform_1(%arg0: i32, %arg1: i32) -> (i32, i32) {
    %c0_i32 = arith.constant 0 : i32
    %c0_i32_0 = arith.constant 0 : i32
    %c0_i32_1 = arith.constant 0 : i32
    return %c0_i32, %c0_i32_0 : i32, i32
  }
  func.func @transform_2(%arg0: i32, %arg1: i32) -> (i32, i32, i32) {
    %c0_i32 = arith.constant 0 : i32
    %c0_i32_0 = arith.constant 0 : i32
    return %arg0, %c0_i32, %arg1 : i32, i32, i32
  }
}

</mosaic_0001>

<bundles_post_ra>
// kernel: tpu_custom_call.1
= control target key start
LH: loop header
LB: loop body
LE: loop exit
PB: predicated region body
PF: predicated region fallthrough
CT: control target
= control target key end

     0   :  { %s494_s9 = smov 0   ;;  %s496_s10 = smov 0   ;;  %s539_s0 = inlined_call_operand.hbm [shape: bf16[2,4,256], index: 0, kind: input, shape index: {}]   ;;  %s540_s1 = inlined_call_operand.vmem [shape: bf16[3,16], index: 1, kind: input, shape index: {}]   ;;  %s541_s2 = inlined_call_operand.vmem [shape: f32[2,3,16], index: 2, kind: output, shape index: {}]  }
   0x1   :  { %s498_s11 = smov 0  }
   0x2 LB: > { %s24_s12 = sadd.s32 1, %s466_s10  ;;  %p368_p0 = scmp.ge.s32.totalorder %s470_s11, 1  ;;  %s470_s11 = sphi %s498_s11, %s12_s11   ;;  %s466_s10 = sphi %s496_s10, %s543_s10   ;;  %s462_s9 = sphi %s494_s9, %s542_s9  }
   0x3   : > { %p26_p1 = scmp.ge.s32.totalorder %s24_s12, 2  ;;  %p92_p2 = scmp.lt.s32.totalorder %s470_s11, 3 }
   0x5   : > { %s545_s12 = smov (%p26_p1, %s24_s12), 0  ;;  %p93_p3 = pnand %p368_p0, %p92_p2 }
   0x6   : > { %p109_p4 = scmp.lt.s32.totalorder (!%p93_p3), %s462_s9, 1  ;;  %s379_s13 = sshll.u32 (!%p93_p3), %s462_s9, 6 }
   0x7   : > { %96 = sbr.rel (%p93_p3) target bundleno = 383 (0x17f), region = 24  ;;  %s124_s16 = scalar_lea.hbm (!%p93_p3), %s539_s0, %s379_s13 }
   0x8   : > { %s472_s17 = smov (!%p93_p3), [#allocation2]   ;;  %s422_s23 = scalar_lea.hbm (!%p93_p3), %s124_s16, 64 }
   0x9   : > { %s132_s18 = sshll.u32 (!%p93_p3), %s472_s17, 4  ;;  %p423_p5 = scmp.ne.s32.totalorder (!%p93_p3), %s124_s16, %s422_s23  ;;  %s133_s18 = int_to_ptr.vmem [resolvable:$true] %s132_s18 }
   0xa   : > { %s424_s26 = scalar_lea.hbm (!%p93_p3), %s539_s0, 128  ;;  %p425_p6 = scmp.lt.u32.totalorder (!%p93_p3), %s124_s16, %s539_s0 }
   0xb   : > { %p426_p7 = scmp.lt.u32.totalorder (!%p93_p3), %s424_s26, %s422_s23  ;;  %p428_p9 = scmp.lt.u32.totalorder (!%p93_p3), %s422_s23, %s124_s16 }
   0xd   : > { %p427_p8 = por (!%p93_p3), %p426_p7, %p425_p6 }
   0xe   : > { %s547_s9 = smov (!%p109_p4, %s462_s9), 1 }
   0xf   : > { %s369_s19 = sshll.u32 %s547_s9, 2  ;;  %p429_p10 = por %p428_p9, %p427_p8 }
  0x10   : > { %s518_s22 = scalar_lea.vmem %s541_s2, %s369_s19 }
  0x11   : > { %p430_p11 = pnand %p429_p10, %p423_p5 }
  0x13   : > { %433 = shalt.err (!%p430_p11)  }
  0x14   : > { %s434_s29 = scalar_lea.vmem %s133_s18, 64  ;;  %s438_s30 = scalar_lea.vmem %s133_s18, 128 }
  0x15   : > { %p435_p12 = scmp.ne.s32.totalorder %s133_s18, %s434_s29  ;;  %p439_p13 = scmp.lt.s32.totalorder %s133_s18, %s133_s18 }
  0x16   : > { %p440_p0 = scmp.lt.s32.totalorder %s438_s30, %s434_s29 }
  0x18   : > { %p441_p1 = por %p440_p0, %p439_p13 }
  0x1a   : > { %p442_p2 = pnand %p441_p1, %p435_p12 }
  0x1c   : > { %445 = shalt.err (!%p442_p2)  }
  0x1d   : > { %135 = dma.hbm_to_vmem [thread:$0]  %s124_s16, 64, %s133_s18, [#allocation3] }
  0x1e   : > { %458 = dma.done.wait [#allocation3], 64 }
  0x1f   : > { %459 = vsyncadd [#allocation3], 4294967232  ;;  %v191_v0 = vlaneseq  ;;  %v473_v1 = vmov 1983009808   ;;  %v185_v6 = vld [vmem:[#allocation2] sm:$0xf] }
  0x20   : > { %v189_v2 = vunpack.c.l.s4 %v473_v1  ;;  %v187_v8 = vcombine.low %v185_v6, %v185_v6  ;;  %v474_v9 = vmov 0.0   ;;  %s475_s3 = smov 125   ;;  %vm476_vm0 = vmmov 0   ;;  %s477_s4 = smov 126   ;;  %v234_v26 = vld [vmem:[%s540_s1] sm:$0x3] }
  0x21   : > { %v192_v3 = vshrl.u32 %v191_v0, 7  ;;  %384 = vmatprep.subr.bf16.mxu0 %v474_v9  ;;  %386 = vmatprep.mubr.msk.bf16.mxu0 %vm476_vm0, %v474_v9  ;;  %s478_s5 = smov 123   ;;  %vm207_vm1 = vcmask 1031168   ;;  %vm223_vm2 = vcmask 1041408   ;;  %vm214_vm3 = vcmask 1022976  }
  0x22   : > { %v190_v4 = vunpack.c.0.s8 %v189_v2  ;;  %vm221_vm4 = vcmask 1006592   ;;  %vm227_vm5 = vcmask 1043456   ;;  %vm230_vm6 = vcmask 1045504  }
  0x23   : > { %vm235_vm7 = vcmask 130048  }
  0x24   : > { %v193_v5 = vsub.s32 %v190_v4, %v192_v3 }
  0x26   : > { %v201_v7 = vrot.slane %v185_v6, %v193_v5  ;;  %v194_v10 = vrot.slane %v187_v8, %v193_v5 }
  0x28   : > { %212 = vrot.lane.b32.xlu1 %v201_v7, %s475_s3  ;;  %v209_v11 = vcombine.low %v201_v7, %v201_v7  ;;  %203 = vrot.lane.b32.xlu0 %v194_v10, %s477_s4  ;;  %v202_v12 = vcombine.high %v194_v10, %v194_v10  ;;  %v216_v13 = vcombine.low %v194_v10, %v194_v10 }
  0x2c   : > { %210 = vrot.lane.b32.xlu1 %v209_v11, %s475_s3  ;;  %205 = vrot.lane.b32.xlu0 %v202_v12, %s477_s4 }
  0x30   : > { %219 = vrot.lane.b32.xlu1 %v194_v10, %s478_s5  ;;  %217 = vrot.lane.b32.xlu0 %v216_v13, %s478_s5 }
  0x9a   : > { %v213_v14 = vpop.permute.xlu1 %212  ;;  %v204_v15 = vpop.permute.xlu0 %203 }
  0x9e   : > { %v211_v16 = vpop.permute.xlu1 %210  ;;  %v206_v17 = vpop.permute.xlu0 %205 }
  0x9f   : > { %v208_v18 = vsel %vm207_vm1, %v204_v15, %v206_v17  ;;  %v215_v21 = vsel %vm214_vm3, %v211_v16, %v213_v14 }
  0xa0   : > { %v226_v19 = vsel %vm223_vm2, %v185_v6, %v208_v18 }
  0xa1   : > { %v229_v24 = vsel %vm227_vm5, %v226_v19, %v215_v21 }
  0xa2   : > { %v220_v20 = vpop.permute.xlu1 %219  ;;  %v218_v22 = vpop.permute.xlu0 %217 }
  0xa3   : > { %v222_v23 = vsel %vm221_vm4, %v218_v22, %v220_v20 }
  0xa4   : > { %v232_v25 = vsel %vm230_vm6, %v229_v24, %v222_v23 }
  0xa5   : > { %385 = vmatpush3.bf16.msra.mxu0 %v232_v25 }
  0xa8   : > { %387 = vmatmul.mubr.msk.bf16.vlgmr.msra.gmra.mrb[0].mxu0 %vm235_vm7, %v234_v26 }
 0x17b   : > { %v273_v27 = vpop.f32.mrb[0].mxu0 }
 0x17c   : > { %279 = vst [vmem:[%s518_s22] sm:$0x7] %v273_v27  ;;  %v388_v28 = vpop.f32.mrb[1].mxu0 }
 0x17d   : > { %v276_v29 = vpop.f32.mrb[2].mxu0 }
 0x17e   : > { %v389_v30 = vpop.f32.mrb[3].mxu0 }
 0x17f PF: > { %s12_s11 = sadd.s32 1, %s470_s11   ;;  %s542_s9 = smov %s466_s10 }
 0x180   : > { %p9_p3 = scmp.ge.s32.totalorder %s12_s11, 4   ;;  %s543_s10 = smov %s545_s12 }
 0x182   :  { %11 = sbr.rel (!%p9_p3) target bundleno = 2 (0x2), region = 74 }
 0x189   :  { %305 = vsyncmov [#allocation3] }
 0x18c   :  { %s306_s8 = vpop.sfrf %305 }
 0x18d   :  { %p377_p4 = scmp.ne.s32.totalorder %s306_s8, 0 }
 0x18f   :  { %310 = shalt.err (%p377_p4)  }
 0x190   :  { %312 = vsyncmov [#allocation3 + $0x1] }
 0x193   :  { %s313_s13 = vpop.sfrf %312 }
 0x194   :  { %p378_p5 = scmp.ne.s32.totalorder %s313_s13, 0 }
 0x196   :  { %317 = shalt.err (%p378_p5)  }

</bundles_post_ra>
